<compile_context>
chip_gen: v7x
topology: tpu7x:2x2x1
jax: 0.10.0
libtpu: 0.0.40
codegen_flags: <defaults>
</compile_context>

<pallas_src>
import jax
import jax.numpy as jnp
from jax.experimental import pallas as pl
from jax.experimental.pallas import tpu as pltpu


def _choose_block_b(B, block_b):
    """Largest divisor of B that is <= block_b and (when B > 1) leaves >= 2
    grid steps, so the v7x second TensorCore isn't idle and the input/output
    DMAs have a step to overlap with."""
    best = 1
    for cand in range(1, min(block_b, B) + 1):
        if B % cand == 0 and (B // cand >= 2 or B == 1):
            best = cand
    return best


def _value_graph_kernel(s_ref,        # (Bb, N, D)  cdt (bf16 or f32)
                        v_ref,        # (Bb, N, D)  f32 (kept f32 for the residual)
                        mask_ref,     # (Bb, 1, N)  f32 additive bias (0 / -1e30)
                        w_sem_ref,    # (D, P)      cdt
                        b_sem_ref,    # (1, P)      f32
                        w_out_ref,    # (2P, D)     cdt  (unsplit -> fused K=2P matmul)
                        b_out_ref,    # (1, D)      f32
                        out_ref):     # (Bb, N, D)  f32
    bb, n, d = v_ref.shape
    p = w_sem_ref.shape[1]
    cdt = w_sem_ref.dtype

    # ---- shared-weight projections: one tall (Bb*N, D) @ (D, P) matmul each ----
    s_flat = s_ref[...].reshape(bb * n, d)          # already cdt (no cast needed)
    v_f32 = v_ref[...]                              # f32, reused for the residual
    v_flat = v_f32.reshape(bb * n, d)

    w_sem = w_sem_ref[...]
    b_sem = b_sem_ref[...]                          # f32 bias

    s_proj = jnp.maximum(
        jnp.dot(s_flat, w_sem, preferred_element_type=jnp.float32) + b_sem, 0.0)
    v_proj = jnp.maximum(
        jnp.dot(v_flat.astype(cdt), w_sem, preferred_element_type=jnp.float32) + b_sem, 0.0)

    s_proj_b = s_proj.reshape(bb, n, p).astype(cdt)
    v_proj_b = v_proj.reshape(bb, n, p).astype(cdt)

    # ---- similarity: contract last dim of both operands (no explicit transpose) ----
    sim = jnp.einsum("bnp,bmp->bnm", s_proj_b, s_proj_b,
                     preferred_element_type=jnp.float32)        # (Bb, N, N) f32

    # ---- additive column mask (precomputed in wrapper): one VALU add ----
    mask_sim = sim + mask_ref[...]                              # (Bb,1,N) bcast over rows

    # ---- softmax in f32; normalize AFTER the matmul (EUP reciprocal) ----
    m = jnp.max(mask_sim, axis=-1, keepdims=True)
    e = jnp.exp(mask_sim - m)                                   # (Bb, N, N) f32
    denom = jnp.sum(e, axis=-1, keepdims=True)                  # (Bb, N, 1) f32
    att_v = jnp.einsum("bnm,bmp->bnp", e.astype(cdt), v_proj_b,
                       preferred_element_type=jnp.float32)      # (Bb, N, P) f32
    att_v = att_v * pl.reciprocal(denom, approx=True)

    # ---- output layer: single fused K=2P matmul (fills 256-deep MXU on v6e/v7x) ----
    cat = jnp.concatenate([v_proj_b, att_v.astype(cdt)], axis=-1)   # (Bb, N, 2P) cdt
    pre = (jnp.dot(cat.reshape(bb * n, 2 * p), w_out_ref[...],
                   preferred_element_type=jnp.float32)
           + b_out_ref[...])
    v_new = jnp.maximum(pre, 0.0)                               # (Bb*N, D) f32

    out_ref[...] = (v_flat + v_new).reshape(bb, n, d).astype(out_ref.dtype)


def value_graph_aggregator(s, v, mask_s, params, *, block_b=8, use_bf16=True):
    """s, v: [B, N, D] float; mask_s: [B] int (# valid tokens per batch item)."""
    B, N, D = s.shape
    assert v.shape == (B, N, D)
    P = params["w_sem"].shape[1]

    cdt = jnp.bfloat16 if use_bf16 else jnp.float32

    bb = _choose_block_b(B, block_b)
    grid = (B // bb,)

    # bf16 stream for s (pure matmul operand); v stays f32 for an exact residual.
    s_in = s.astype(cdt)
    v_in = v.astype(jnp.float32)

    # Precomputed additive mask: 0 for valid columns, -1e30 for masked columns.
    col = jnp.arange(N, dtype=jnp.int32)[None, :]
    mask_bias = jnp.where(col < mask_s.astype(jnp.int32)[:, None],
                          0.0, -1e30).astype(jnp.float32).reshape(B, 1, N)

    w_sem = params["w_sem"].astype(cdt)                       # (D, P)
    b_sem = params["b_sem"].reshape(1, P).astype(jnp.float32)
    w_out = params["w_out"].astype(cdt)                       # (2P, D), unsplit (fused K=2P)
    b_out = params["b_out"].reshape(1, D).astype(jnp.float32)

    out = pl.pallas_call(
        _value_graph_kernel,
        out_shape=jax.ShapeDtypeStruct((B, N, D), jnp.float32),
        grid=grid,
        in_specs=[
            pl.BlockSpec((bb, N, D), lambda b: (b, 0, 0)),    # s  (cdt)
            pl.BlockSpec((bb, N, D), lambda b: (b, 0, 0)),    # v  (f32)
            pl.BlockSpec((bb, 1, N), lambda b: (b, 0, 0)),    # additive mask
            pl.BlockSpec((D, P), lambda b: (0, 0)),           # w_sem
            pl.BlockSpec((1, P), lambda b: (0, 0)),           # b_sem
            pl.BlockSpec((2 * P, D), lambda b: (0, 0)),       # w_out
            pl.BlockSpec((1, D), lambda b: (0, 0)),           # b_out
        ],
        out_specs=pl.BlockSpec((bb, N, D), lambda b: (b, 0, 0)),
        compiler_params=pltpu.CompilerParams(
            dimension_semantics=("parallel",),                # batch blocks -> both TCs on v7x
            vmem_limit_bytes=32 * 1024 * 1024,                # raise v5e's 16 MiB default; safe on all gens
        ),
    )(s_in, v_in, mask_bias, w_sem, b_sem, w_out, b_out)

    return out.astype(s.dtype)


def _reference(s, v, mask_s, params, *, use_bf16=True):
    """Pure-JAX reference mirroring the PyTorch forward (same matmul operand
    precision as the kernel: bf16 operands / f32 accumulation when use_bf16)."""
    cdt = jnp.bfloat16 if use_bf16 else jnp.float32
    P = params["w_sem"].shape[1]
    w_sem = params["w_sem"].astype(cdt)
    b_sem = params["b_sem"]
    w_out = params["w_out"].astype(cdt)
    b_out = params["b_out"]

    def relu_fc(x, w, b):
        return jax.nn.relu(
            jnp.dot(x.astype(cdt), w, preferred_element_type=jnp.float32) + b)

    s_proj = relu_fc(s.astype(cdt), w_sem, b_sem)
    v_proj = relu_fc(v, w_sem, b_sem)
    sim = jnp.einsum("bnd,bmd->bnm", s_proj.astype(cdt), s_proj.astype(cdt),
                     preferred_element_type=jnp.float32)
    col = jnp.arange(sim.shape[2])[None, None, :]
    mask_sim = jnp.where(col < mask_s[:, None, None], sim, sim - 1e30)
    m = jnp.max(mask_sim, axis=-1, keepdims=True)
    e = jnp.exp(mask_sim - m)
    denom = jnp.sum(e, axis=-1, keepdims=True)
    att_v = jnp.einsum("bnm,bmp->bnp", e.astype(cdt), v_proj.astype(cdt),
                       preferred_element_type=jnp.float32) / denom
    cat = jnp.concatenate([v_proj.astype(cdt), att_v.astype(cdt)], axis=-1)
    pre = jnp.dot(cat, w_out, preferred_element_type=jnp.float32) + b_out
    v_new = jax.nn.relu(pre)
    return v + v_new


def _init_params(key, sem_dim, value_dim, vs_proj_dim):
    """Deterministic synthetic weights (weight-norm folded into eff. weights)."""
    k1, k2, k3, k4, k5, k6 = jax.random.split(key, 6)
    scale_sem = 1.0 / jnp.sqrt(sem_dim)
    scale_out = 1.0 / jnp.sqrt(2 * vs_proj_dim)
    return {
        # sem_embed_is: Linear(sem_dim -> vs_proj_dim), stored (in, out)
        "w_sem": jax.random.normal(k1, (sem_dim, vs_proj_dim), jnp.float32) * scale_sem,
        "b_sem": jax.random.normal(k2, (vs_proj_dim,), jnp.float32) * 0.01,
        # output_layer: Linear(2*vs_proj_dim -> value_dim), stored (in, out)
        "w_out": jax.random.normal(k3, (2 * vs_proj_dim, value_dim), jnp.float32) * scale_out,
        "b_out": jax.random.normal(k4, (value_dim,), jnp.float32) * 0.01,
        # value_embed_is exists in __init__ but is unused in forward; kept for parity.
        "w_val_unused": jax.random.normal(k5, (value_dim, vs_proj_dim), jnp.float32) * scale_sem,
        "b_val_unused": jax.random.normal(k6, (vs_proj_dim,), jnp.float32) * 0.01,
    }


if __name__ == "__main__":
    # Small shapes consistent with the module ([50, 300] scaled down).
    B, N = 2, 8                 # batch, tokens (original N=50)
    sem_dim = value_dim = 32    # original 300
    vs_proj_dim = 16

    key = jax.random.PRNGKey(0)
    ks, kv, kp = jax.random.split(key, 3)
    s = jax.random.normal(ks, (B, N, sem_dim), jnp.float32)
    v = jax.random.normal(kv, (B, N, value_dim), jnp.float32)
    mask_s = jnp.array([5, 8], dtype=jnp.int32)   # num valid tokens per batch

    params = _init_params(kp, sem_dim, value_dim, vs_proj_dim)

    for use_bf16 in (False, True):
        out = value_graph_aggregator(s, v, mask_s, params, use_bf16=use_bf16)
        out = jax.block_until_ready(out)
        ref = _reference(s, v, mask_s, params, use_bf16=use_bf16)
        assert out.shape == (B, N, value_dim)
        # Tolerance covers the EUP approx-reciprocal and MXU-vs-XLA accumulation order.
        assert jnp.allclose(out, ref, atol=2e-2, rtol=2e-2), (
            f"mismatch (use_bf16={use_bf16}), "
            f"max abs err={float(jnp.max(jnp.abs(out - ref)))}")

    print("KERNEL_OK")
</pallas_src>

<mosaic_0001>
module attributes {stable_mosaic.version = 11 : i64} {
  func.func @_value_graph_kernel(%arg0: i32, %arg1: memref<1x8x32xf32, #tpu.memory_space<vmem>>, %arg2: memref<1x8x32xf32, #tpu.memory_space<vmem>>, %arg3: memref<1x1x8xf32, #tpu.memory_space<vmem>>, %arg4: memref<32x16xf32, #tpu.memory_space<vmem>>, %arg5: memref<1x16xf32, #tpu.memory_space<vmem>>, %arg6: memref<32x32xf32, #tpu.memory_space<vmem>>, %arg7: memref<1x32xf32, #tpu.memory_space<vmem>>, %arg8: memref<1x8x32xf32, #tpu.memory_space<vmem>>) attributes {dimension_semantics = [#tpu.dimension_semantics<parallel>], iteration_bounds = array<i64: 2>, scalar_prefetch = 0 : i64, scratch_operands = 0 : i64, tpu.core_type = #tpu.core_type<tc>, window_params = [{transform_indices = @transform_0, window_bounds = array<i64: 1, 8, 32>}, {transform_indices = @transform_1, window_bounds = array<i64: 1, 8, 32>}, {transform_indices = @transform_2, window_bounds = array<i64: 1, 1, 8>}, {pipeline_mode = #tpu.pipeline_mode<synchronous>, transform_indices = @transform_3, window_bounds = array<i64: 32, 16>}, {pipeline_mode = #tpu.pipeline_mode<synchronous>, transform_indices = @transform_4, window_bounds = array<i64: 1, 16>}, {pipeline_mode = #tpu.pipeline_mode<synchronous>, transform_indices = @transform_5, window_bounds = array<i64: 32, 32>}, {pipeline_mode = #tpu.pipeline_mode<synchronous>, transform_indices = @transform_6, window_bounds = array<i64: 1, 32>}, {transform_indices = @transform_7, window_bounds = array<i64: 1, 8, 32>}]} {
    %c0 = arith.constant 0 : index
    %c0_0 = arith.constant 0 : index
    %c0_1 = arith.constant 0 : index
    %0 = vector.load %arg1[%c0, %c0_0, %c0_1] : memref<1x8x32xf32, #tpu.memory_space<vmem>>, vector<1x8x32xf32>
    %1 = vector.shape_cast %0 : vector<1x8x32xf32> to vector<8x32xf32>
    %c0_2 = arith.constant 0 : index
    %c0_3 = arith.constant 0 : index
    %c0_4 = arith.constant 0 : index
    %2 = vector.load %arg2[%c0_2, %c0_3, %c0_4] : memref<1x8x32xf32, #tpu.memory_space<vmem>>, vector<1x8x32xf32>
    %3 = vector.shape_cast %2 : vector<1x8x32xf32> to vector<8x32xf32>
    %c0_5 = arith.constant 0 : index
    %c0_6 = arith.constant 0 : index
    %4 = vector.load %arg4[%c0_5, %c0_6] : memref<32x16xf32, #tpu.memory_space<vmem>>, vector<32x16xf32>
    %c0_7 = arith.constant 0 : index
    %c0_8 = arith.constant 0 : index
    %5 = vector.load %arg5[%c0_7, %c0_8] : memref<1x16xf32, #tpu.memory_space<vmem>>, vector<1x16xf32>
    %cst = arith.constant dense<0.000000e+00> : vector<8x16xf32>
    %6 = tpu.matmul %1, %4, %cst {dimension_numbers = #tpu.dot_dimension_numbers<[1], [0], [0], [1], [0, 0, 1, 1], [], []>} : vector<8x32xf32>, vector<32x16xf32>, vector<8x16xf32> -> vector<8x16xf32>
    %7 = vector.broadcast %5 : vector<1x16xf32> to vector<8x16xf32>
    %8 = arith.addf %6, %7 : vector<8x16xf32>
    %cst_9 = arith.constant 0.000000e+00 : f32
    %9 = vector.broadcast %cst_9 : f32 to vector<8x16xf32>
    %10 = arith.maximumf %8, %9 : vector<8x16xf32>
    %cst_10 = arith.constant dense<0.000000e+00> : vector<8x16xf32>
    %11 = tpu.matmul %3, %4, %cst_10 {dimension_numbers = #tpu.dot_dimension_numbers<[1], [0], [0], [1], [0, 0, 1, 1], [], []>} : vector<8x32xf32>, vector<32x16xf32>, vector<8x16xf32> -> vector<8x16xf32>
    %12 = vector.broadcast %5 : vector<1x16xf32> to vector<8x16xf32>
    %13 = arith.addf %11, %12 : vector<8x16xf32>
    %cst_11 = arith.constant 0.000000e+00 : f32
    %14 = vector.broadcast %cst_11 : f32 to vector<8x16xf32>
    %15 = arith.maximumf %13, %14 : vector<8x16xf32>
    %16 = vector.shape_cast %10 : vector<8x16xf32> to vector<1x8x16xf32>
    %17 = vector.shape_cast %15 : vector<8x16xf32> to vector<1x8x16xf32>
    "tpu.trace_start"() <{level = 10 : i32, message = "bnp,bmp->bnm"}> : () -> ()
    %cst_12 = arith.constant dense<0.000000e+00> : vector<1x8x8xf32>
    %18 = tpu.matmul %16, %16, %cst_12 {dimension_numbers = #tpu.dot_dimension_numbers<[2], [2], [1], [1], [0, 0, 0, 1, 1, 1], [0], [0]>} : vector<1x8x16xf32>, vector<1x8x16xf32>, vector<1x8x8xf32> -> vector<1x8x8xf32>
    "tpu.trace_stop"() : () -> ()
    %c0_13 = arith.constant 0 : index
    %c0_14 = arith.constant 0 : index
    %c0_15 = arith.constant 0 : index
    %19 = vector.load %arg3[%c0_13, %c0_14, %c0_15] : memref<1x1x8xf32, #tpu.memory_space<vmem>>, vector<1x1x8xf32>
    %20 = vector.broadcast %19 : vector<1x1x8xf32> to vector<1x8x8xf32>
    %21 = arith.addf %18, %20 : vector<1x8x8xf32>
    %cst_16 = arith.constant dense<0xFF800000> : vector<1x8xf32>
    %22 = vector.multi_reduction <maximumf>, %21, %cst_16 [2] : vector<1x8x8xf32> to vector<1x8xf32>
    %23 = vector.shape_cast %22 : vector<1x8xf32> to vector<1x8x1xf32>
    %24 = vector.broadcast %23 : vector<1x8x1xf32> to vector<1x8x8xf32>
    %25 = arith.subf %21, %24 : vector<1x8x8xf32>
    %26 = math.exp %25 : vector<1x8x8xf32>
    %cst_17 = arith.constant dense<0.000000e+00> : vector<1x8xf32>
    %27 = vector.multi_reduction <add>, %26, %cst_17 [2] : vector<1x8x8xf32> to vector<1x8xf32>
    %28 = vector.shape_cast %27 : vector<1x8xf32> to vector<1x8x1xf32>
    "tpu.trace_start"() <{level = 10 : i32, message = "bnm,bmp->bnp"}> : () -> ()
    %cst_18 = arith.constant dense<0.000000e+00> : vector<1x8x16xf32>
    %29 = tpu.matmul %26, %17, %cst_18 {dimension_numbers = #tpu.dot_dimension_numbers<[2], [1], [1], [2], [0, 0, 0, 1, 1, 2], [0], [0]>} : vector<1x8x8xf32>, vector<1x8x16xf32>, vector<1x8x16xf32> -> vector<1x8x16xf32>
    "tpu.trace_stop"() : () -> ()
    %30 = tpu.reciprocal %28 {approx = true} : vector<1x8x1xf32> -> vector<1x8x1xf32>
    %31 = vector.broadcast %30 : vector<1x8x1xf32> to vector<1x8x16xf32>
    %32 = arith.mulf %29, %31 : vector<1x8x16xf32>
    %33 = tpu.concatenate %17, %32 in 2 : vector<1x8x16xf32>, vector<1x8x16xf32> -> vector<1x8x32xf32>
    %34 = vector.shape_cast %33 : vector<1x8x32xf32> to vector<8x32xf32>
    %c0_19 = arith.constant 0 : index
    %c0_20 = arith.constant 0 : index
    %35 = vector.load %arg6[%c0_19, %c0_20] : memref<32x32xf32, #tpu.memory_space<vmem>>, vector<32x32xf32>
    %cst_21 = arith.constant dense<0.000000e+00> : vector<8x32xf32>
    %36 = tpu.matmul %34, %35, %cst_21 {dimension_numbers = #tpu.dot_dimension_numbers<[1], [0], [0], [1], [0, 0, 1, 1], [], []>} : vector<8x32xf32>, vector<32x32xf32>, vector<8x32xf32> -> vector<8x32xf32>
    %c0_22 = arith.constant 0 : index
    %c0_23 = arith.constant 0 : index
    %37 = vector.load %arg7[%c0_22, %c0_23] : memref<1x32xf32, #tpu.memory_space<vmem>>, vector<1x32xf32>
    %38 = vector.broadcast %37 : vector<1x32xf32> to vector<8x32xf32>
    %39 = arith.addf %36, %38 : vector<8x32xf32>
    %cst_24 = arith.constant 0.000000e+00 : f32
    %40 = vector.broadcast %cst_24 : f32 to vector<8x32xf32>
    %41 = arith.maximumf %39, %40 : vector<8x32xf32>
    %42 = arith.addf %3, %41 : vector<8x32xf32>
    %43 = vector.shape_cast %42 : vector<8x32xf32> to vector<1x8x32xf32>
    %c0_25 = arith.constant 0 : index
    %c0_26 = arith.constant 0 : index
    %c0_27 = arith.constant 0 : index
    %44 = vector.load %arg8[%c0_25, %c0_26, %c0_27] : memref<1x8x32xf32, #tpu.memory_space<vmem>>, vector<1x8x32xf32>
    tpu.vector_store %arg8[%c0_25, %c0_26, %c0_27], %43 {strides = array<i32>} : memref<1x8x32xf32, #tpu.memory_space<vmem>>, vector<1x8x32xf32>,
    return
  }
  func.func @transform_0(%arg0: i32) -> (i32, i32, i32) {
    %c0_i32 = arith.constant 0 : i32
    %c0_i32_0 = arith.constant 0 : i32
    %c0_i32_1 = arith.constant 0 : i32
    return %arg0, %c0_i32, %c0_i32_0 : i32, i32, i32
  }
  func.func @transform_1(%arg0: i32) -> (i32, i32, i32) {
    %c0_i32 = arith.constant 0 : i32
    %c0_i32_0 = arith.constant 0 : i32
    %c0_i32_1 = arith.constant 0 : i32
    return %arg0, %c0_i32, %c0_i32_0 : i32, i32, i32
  }
  func.func @transform_2(%arg0: i32) -> (i32, i32, i32) {
    %c0_i32 = arith.constant 0 : i32
    %c0_i32_0 = arith.constant 0 : i32
    %c0_i32_1 = arith.constant 0 : i32
    return %arg0, %c0_i32, %c0_i32_0 : i32, i32, i32
  }
  func.func @transform_3(%arg0: i32) -> (i32, i32) {
    %c0_i32 = arith.constant 0 : i32
    %c0_i32_0 = arith.constant 0 : i32
    %c0_i32_1 = arith.constant 0 : i32
    return %c0_i32, %c0_i32_0 : i32, i32
  }
  func.func @transform_4(%arg0: i32) -> (i32, i32) {
    %c0_i32 = arith.constant 0 : i32
    %c0_i32_0 = arith.constant 0 : i32
    %c0_i32_1 = arith.constant 0 : i32
    return %c0_i32, %c0_i32_0 : i32, i32
  }
  func.func @transform_5(%arg0: i32) -> (i32, i32) {
    %c0_i32 = arith.constant 0 : i32
    %c0_i32_0 = arith.constant 0 : i32
    %c0_i32_1 = arith.constant 0 : i32
    return %c0_i32, %c0_i32_0 : i32, i32
  }
  func.func @transform_6(%arg0: i32) -> (i32, i32) {
    %c0_i32 = arith.constant 0 : i32
    %c0_i32_0 = arith.constant 0 : i32
    %c0_i32_1 = arith.constant 0 : i32
    return %c0_i32, %c0_i32_0 : i32, i32
  }
  func.func @transform_7(%arg0: i32) -> (i32, i32, i32) {
    %c0_i32 = arith.constant 0 : i32
    %c0_i32_0 = arith.constant 0 : i32
    %c0_i32_1 = arith.constant 0 : i32
    return %arg0, %c0_i32, %c0_i32_0 : i32, i32, i32
  }
}

</mosaic_0001>

<bundles_post_ra>
// kernel: tpu_custom_call.1
= control target key start
LH: loop header
LB: loop body
LE: loop exit
PB: predicated region body
PF: predicated region fallthrough
CT: control target
= control target key end

     0   :  { %12 = vsyncpa [#allocation3], 0  ;;  %s1378_s0 = inlined_call_operand.vmem [shape: f32[2,8,32], index: 0, kind: input, shape index: {}]   ;;  %s1379_s1 = inlined_call_operand.hbm [shape: f32[2,8,32], index: 1, kind: input, shape index: {}]   ;;  %s1380_s2 = inlined_call_operand.vmem [shape: f32[2,1,8], index: 2, kind: input, shape index: {}]   ;;  %s1381_s3 = inlined_call_operand.vmem [shape: f32[32,16], index: 3, kind: input, shape index: {}]   ;;  %s1382_s4 = inlined_call_operand.vmem [shape: f32[1,16], index: 4, kind: input, shape index: {}]   ;;  %s1383_s5 = inlined_call_operand.vmem [shape: f32[32,32], index: 5, kind: input, shape index: {}]   ;;  %s1384_s6 = inlined_call_operand.vmem [shape: f32[1,32], index: 6, kind: input, shape index: {}]   ;;  %s1385_s7 = inlined_call_operand.hbm [shape: f32[2,8,32], index: 7, kind: output, shape index: {}]  }
   0x1   :  { %14 = vsyncpa [#allocation3 + $0x1], 0 }
   0x2   :  { %15 = vsyncpa [#allocation4], 0 }
   0x3   :  { %17 = vsyncpa [#allocation4 + $0x1], 0  ;;  %s1150_s24 = smov 0   ;;  %s1152_s25 = smov 0  }
   0x4   :  { %s1154_s26 = smov 0   ;;  %s1156_s27 = smov 0  }
   0x5 LB: > { %s1171_s28 = sadd.s32 4294967295, %s1102_s27   ;;  %s850_s29 = sadd.s32 4294967294, %s1102_s27   ;;  %s1102_s27 = sphi %s1156_s27, %s1400_s27   ;;  %s1098_s26 = sphi %s1154_s26, %s1399_s26   ;;  %s1094_s25 = sphi %s1152_s25, %s1398_s25   ;;  %s1090_s24 = sphi %s1150_s24, %s1397_s24  }
   0x6   : > { %s1175_s30 = sadd.s32 1, %s1102_s27   ;;  %s56_s8 = sadd.s32 1, %s1098_s26 }
   0x7   : > { %s53_s9 = ssub.s32 %s1102_s27, %s1175_s30  ;;  %p63_p0 = scmp.ne.s32.totalorder %s1098_s26, %s1094_s25 }
   0x8   : > { %p54_p1 = scmp.eq.s32.totalorder %s53_s9, 0  ;;  %p64_p2 = scmp.eq.s32.totalorder %s1102_s27, 0 }
   0x9   : > { %p69_p3 = scmp.ne.s32.totalorder %s1094_s25, %s1090_s24  ;;  %p70_p4 = scmp.eq.s32.totalorder %s1171_s28, 0 }
   0xa   : > { %s1187_s10 = scalar_select %p54_p1, %s1098_s26, %s56_s8  }
   0xb   : > { %p1189_p5 = por %p64_p2, %p63_p0  ;;  %p1193_p6 = por %p70_p4, %p69_p3 }
   0xc   : > { %p203_p7 = scmp.eq.s32.totalorder %s1171_s28, 1  ;;  %p209_p8 = scmp.eq.s32.totalorder %s850_s29, 1 }
   0xd   : > { %p964_p10 = scmp.lt.s32.totalorder %s1102_s27, 2  ;;  %s248_s15 = sand.u32 1, %s1098_s26  }
   0xe   : > { %p1200_p11 = por %p203_p7, %p63_p0  ;;  %p1204_p12 = por %p209_p8, %p69_p3 }
   0xf   : > { %s854_s16 = sshll.u32 %s1102_s27, 7  ;;  %s853_s17 = sshll.u32 %s248_s15, 3 }
  0x10   : > { %s1389_s13 = scalar_select %p1200_p11, 1, 0 }
  0x11   : > { %s1390_s14 = scalar_select %p1204_p12, 1, 0 }
  0x12   : > { %s1213_s20 = scalar_lea.hbm %s1379_s1, %s854_s16  ;;  %s252_s21 = scalar_lea.vmem [#allocation2], %s853_s17 }
  0x13   : > { %s259_s22 = sshll.u32 %s252_s21, 4  ;;  %p1217_p13 = pnand %p964_p10, %p1189_p5  ;;  %s1221_s22 = int_to_ptr.vmem [resolvable:$true] %s259_s22 }
  0x14   : > { %s249_s29 = scalar_lea.sflag [#allocation3], %s248_s15  ;;  %s1006_s8 = scalar_lea.hbm %s1213_s20, 128 }
  0x15   : > { %p1007_p2 = scmp.ne.s32.totalorder %s1213_s20, %s1006_s8  ;;  %p1008_p3 = pneg %p1217_p13 }
  0x16   : > { %s1011_s16 = scalar_lea.hbm %s1379_s1, 256  ;;  %p1012_p5 = scmp.lt.u32.totalorder %s1213_s20, %s1379_s1 }
  0x17   : > { %p1009_p4 = pnand %p1008_p3, %p1007_p2  ;;  %p1013_p8 = scmp.lt.u32.totalorder %s1011_s16, %s1006_s8 }
  0x18   : > { %p1015_p9 = scmp.lt.u32.totalorder %s1006_s8, %s1213_s20 }
  0x19   : > { %p1010_p7 = pneg %p1009_p4  ;;  %p1014_p10 = por %p1013_p8, %p1012_p5 }
  0x1b   : > { %p1016_p0 = por %p1015_p9, %p1014_p10 }
  0x1d   : > { %p1017_p1 = pnand %p1016_p0, %p1010_p7 }
  0x1f   : > { %1020 = shalt.err (!%p1017_p1)
}
  0x20   : > { %s1021_s15 = scalar_lea.vmem %s1221_s22, 128  ;;  %s1104_s19 = smov [#allocation2]  }
  0x21   : > { %p1022_p2 = scmp.ne.s32.totalorder %s1221_s22, %s1021_s15  ;;  %s1026_s21 = sshll.u32 %s1104_s19, 4  ;;  %s1027_s21 = int_to_ptr.vmem [resolvable:$false] %s1026_s21 }
  0x22   : > { %s1028_s9 = scalar_lea.vmem %s1027_s21, 256  ;;  %p1029_p11 = scmp.lt.s32.totalorder %s1221_s22, %s1027_s21 }
  0x23   : > { %p1024_p4 = pnand %p1022_p2, %p1008_p3  ;;  %p1030_p5 = scmp.lt.s32.totalorder %s1028_s9, %s1021_s15 }
  0x25   : > { %p1025_p12 = pneg %p1024_p4  ;;  %p1031_p8 = por %p1030_p5, %p1029_p11 }
  0x27   : > { %p1032_p9 = pnand %p1031_p8, %p1025_p12 }
  0x29   : > { %1035 = shalt.err (!%p1032_p9)
}
  0x2a   : > { %959 = dma.hbm_to_vmem [thread:$0]  (!%p1217_p13), %s1213_s20, 128, %s1221_s22, %s249_s29  }
  0x2b   : > { %p1392_p0 = scmp.lt.s32.totalorder %s1102_s27, 3  ;;  %p1393_p1 = scmp.ge.s32.totalorder %s1102_s27, 1 }
  0x2d   : > { %p271_p3 = pnand %p1393_p1, %p1392_p0 }
  0x2e   : > { %s1255_s8 = sand.u32 (!%p271_p3), 1, %s1094_s25  }
  0x2f   : > { %274 = sbr.rel (%p271_p3) target bundleno = 1219 (0x4c3), region = 48  ;;  %s856_s11 = sshll.u32 (!%p271_p3), %s1255_s8, 3 }
  0x30   : > { %s277_s16 = scalar_lea.sflag (!%p271_p3), [#allocation3], %s1255_s8  ;;  %s1261_s23 = scalar_lea.vmem (!%p271_p3), [#allocation2], %s856_s11 }
  0x36   : > { %1081 = dma.done.wait (%p1193_p6), %s277_s16, 128  }
  0x37   : > { %1083 = vsyncadd (%p1193_p6), %s277_s16, 4294967168  ;;  %p318_p11 = scmp.lt.s32.totalorder %s1171_s28, 1  ;;  %v1105_v0 = vmov 0.0|0.0   ;;  %vm1106_vm0 = vmmov 0   ;;  %v1107_v1 = vmov 0.0   ;;  %v327_v2 = vld [vmem:[%s1381_s3] sm:$0xff] }
  0x38   : > { %934 = vmatprep.subr.bf16.mxu0 %v1105_v0  ;;  %899 = vmatprep.mubr.msk.f32.mxu0 %vm1106_vm0, %v1107_v1  ;;  %v328_v3 = vld [vmem:[%s1381_s3 + $0x8] sm:$0xff]  ;;  %v329_v4 = vld [vmem:[%s1381_s3 + $0x10] sm:$0xff]  ;;  %v330_v6 = vld [vmem:[%s1381_s3 + $0x18] sm:$0xff]  ;;  %vm338_vm1 = vcmask 261120   ;;  %vm494_vm2 = vcmask 130048   ;;  %vm568_vm3 = vcmask 64512  }
  0x39   : > { %940 = vmatprep.subr.bf16.mxu1 %v1105_v0  ;;  %910 = vmatprep.mubr.msk.f32.mxu1 %vm1106_vm0, %v1107_v1  ;;  %s1273_s20 = scalar_select %p318_p11, %s1171_s28, 1  ;;  %v935_v5 = vpack.c.bf16 %v328_v3, %v327_v2  ;;  %v938_v7 = vpack.c.bf16 %v330_v6, %v329_v4  ;;  %v326_v9 = vld [vmem:[%s1261_s23] sm:$0xff]  ;;  %v660_v31 = vld [vmem:[%s1383_s5 + $0x10] sm:$0xff]  ;;  %v661_v33 = vld [vmem:[%s1383_s5 + $0x18] sm:$0xff] }
  0x3a   : > { %v859_v10 = vld [vmem:[%s1382_s4] ss:$0 sm:$0xff]  ;;  %v659_v30 = vld [vmem:[%s1383_s5 + $0x8] sm:$0xff]  ;;  %v950_v34 = vpack.c.bf16 %v661_v33, %v660_v31  ;;  %s1108_s17 = smov 16   ;;  %s317_s19 = scalar_lea.vmem [#allocation5], %s856_s11 }
  0x3b   : > { %s858_s9 = sshll.u32 %s1273_s20, 3  ;;  %936 = vmatpush3.bf16.msra.mxu0 %v935_v5  ;;  %942 = vmatpush3.bf16.msra.mxu1 %v935_v5  ;;  %s324_s15 = scalar_lea.vmem %s1380_s2, %s1273_s20  ;;  %v658_v29 = vld [vmem:[%s1383_s5] sm:$0xff] }
  0x3c   : > { %937 = vmatprep.subr.bf16.mxu0 %v1105_v0  ;;  %s321_s29 = scalar_lea.vmem %s1378_s0, %s858_s9  ;;  %943 = vmatprep.subr.bf16.mxu1 %v1105_v0  ;;  %v862_v19 = vld [vmem:[%s324_s15] ss:$0 sm:$0xff]  ;;  %v947_v32 = vpack.c.bf16 %v659_v30, %v658_v29  ;;  %s869_s15 = sshll.u32 %s1171_s28, 7 }
  0x3d   : > { %v325_v8 = vld [vmem:[%s321_s29] sm:$0xff]  ;;  %s759_s21 = sshll.u32 %s317_s19, 4  ;;  %s1333_s16 = scalar_lea.hbm %s1385_s7, %s869_s15  ;;  %s1335_s21 = int_to_ptr.vmem [resolvable:$true] %s759_s21 }
  0x3e   : > { %v866_v42 = vld [vmem:[%s1384_s6] ss:$0 sm:$0xff]  ;;  %s746_s22 = scalar_lea.sflag [#allocation4], %s1255_s8  ;;  %s1036_s29 = scalar_lea.vmem %s1335_s21, 128 }
  0x3f   : > { %939 = vmatpush3.bf16.msra.mxu0 %v938_v7  ;;  %945 = vmatpush3.bf16.msra.mxu1 %v938_v7  ;;  %p1037_p6 = scmp.ne.s32.totalorder %s1335_s21, %s1036_s29  ;;  %p1394_p12 = scmp.ne.s32.totalorder %s1389_s13, 0 }
  0x40   : > { %913 = vmatprep.subr.mxu1 %v1107_v1  ;;  %946 = vmatprep.subr.bf16.mxu0 %v1105_v0  ;;  %s1109_s28 = smov [#allocation5]  }
  0x41   : > { %p1038_p13 = pnand %p1037_p6, %p1394_p12  ;;  %s1040_s11 = sshll.u32 %s1109_s28, 4  ;;  %s1041_s11 = int_to_ptr.vmem [resolvable:$false] %s1040_s11 }
  0x42   : > { %900 = vmatmul.mubr.msk.f32.vlgmr.msra.gmra.mrb[0].mxu0 %vm338_vm1, %v325_v8  ;;  %911 = vmatmul.mubr.msk.f32.vlgmr.msra.gmra.mrb[0].mxu1 %vm338_vm1, %v326_v9  ;;  %s1042_s12 = scalar_lea.vmem %s1041_s11, 256  ;;  %p1043_p10 = scmp.lt.s32.totalorder %s1335_s21, %s1041_s11 }
  0x43   : > { %931 = vmatprep.mubr.msk.f32.mxu0 %vm1106_vm0, %v1107_v1  ;;  %915 = vmatprep.mubr.msk.f32.mxu1 %vm1106_vm0, %v1107_v1  ;;  %p1039_p7 = pneg %p1038_p13  ;;  %p1044_p2 = scmp.lt.s32.totalorder %s1042_s12, %s1036_s29 }
  0x44   : > { %948 = vmatpush3.bf16.msra.mxu0 %v947_v32 }
  0x45   : > { %949 = vmatprep.subr.bf16.mxu0 %v1105_v0  ;;  %p1045_p4 = por %p1044_p2, %p1043_p10 }
  0x47   : > { %p1046_p5 = pnand %p1045_p4, %p1039_p7 }
  0x48   : > { %951 = vmatpush3.bf16.msra.mxu0 %v950_v34 }
 0x115   : > { %v408_v11 = vpop.f32.mrb[0].mxu0  ;;  %v482_v15 = vpop.f32.mrb[0].mxu1 }
 0x116   : > { %v409_v12 = vadd.f32 %v859_v10, %v408_v11  ;;  %v901_v13 = vpop.f32.mrb[1].mxu0  ;;  %v483_v16 = vadd.f32 %v859_v10, %v482_v15  ;;  %v912_v17 = vpop.f32.mrb[1].mxu1 }
 0x118   : > { %v412_v14 = vmax.f32 %v409_v12, 0.0  ;;  %v486_v18 = vmax.f32 %v483_v16, 0.0 }
 0x11a   : > { %914 = vmatpush3.xpose.msk.msra.mxu1 %vm494_vm2, %v412_v14 }
 0x11b   : > { %918 = vmatprep.subr.mxu1 %v1107_v1 }
 0x11d   : > { %916 = vmatmul.mubr.msk.f32.vlgmr.msra.gmra.mrb[2].mxu1 %vm494_vm2, %v412_v14 }
 0x11e   : > { %920 = vmatprep.mubr.msk.f32.mxu1 %vm1106_vm0, %v1107_v1  ;;  %919 = vmatpush3.msra.mxu1 %v486_v18 }
 0x1f0   : > { %v564_v20 = vpop.f32.mrb[2].mxu1 }
 0x1f1   : > { %v565_v21 = vadd.f32 %v862_v19, %v564_v20  ;;  %v917_v22 = vpop.f32.mrb[3].mxu1 }
 0x1f3   : > { %v569_v23 = vsel %vm568_vm3, %v565_v21, -inf }
 0x1f4   : > { %570 = vmax.xlane.f32.xlu0 %v569_v23 }
 0x281   : > { %v571_v24 = vpop.xlane.xlu0 %570 }
 0x282   : > { %v572_v25 = vsub.f32 %v565_v21, %v571_v24 }
 0x284   : > { %v573_v26 = vmul.f32 1.442695, %v572_v25 }
 0x286   : > { %1002 = vpow2.f32 %v573_v26 }
 0x290   : > { %v1003_v27 = vpop.eup %1002 }
 0x291   : > { %921 = vmatmul.mubr.msk.f32.vlgmr.msra.gmra.mrb[4].mxu1 %vm568_vm3, %v1003_v27  ;;  %v575_v28 = vsel %vm568_vm3, %v1003_v27, 0.0 }
 0x292   : > { %576 = vadd.xlane.f32.xlu0 %v575_v28 }
 0x31f   : > { %v577_v35 = vpop.xlane.xlu0 %576 }
 0x320   : > { %1004 = vrcp.f32 %v577_v35 }
 0x32a   : > { %v1005_v36 = vpop.eup %1004 }
 0x364   : > { %v647_v37 = vpop.f32.mrb[4].mxu1 }
 0x365   : > { %v652_v38 = vmul.f32 %v1005_v36, %v647_v37  ;;  %v922_v39 = vpop.f32.mrb[5].mxu1 }
 0x367   : > { %654 = vrot.lane.b32.xlu1 %v652_v38, %s1108_s17 }
 0x3d9   : > { %v655_v40 = vpop.permute.xlu1 %654 }
 0x3da   : > { %v657_v41 = vsel %vm494_vm2, %v486_v18, %v655_v40 }
 0x3db   : > { %932 = vmatmul.mubr.msk.f32.vlgmr.msra.gmra.mrb[2].mxu0 %vm338_vm1, %v657_v41 }
 0x4ae   : > { %v738_v43 = vpop.f32.mrb[2].mxu0 }
 0x4af   : > { %v739_v44 = vadd.f32 %v866_v42, %v738_v43  ;;  %v933_v45 = vpop.f32.mrb[3].mxu0 }
 0x4b1   : > { %v742_v46 = vmax.f32 %v739_v44, 0.0 }
 0x4b3   : > { %v743_v47 = vadd.f32 %v742_v46, %v326_v9 }
 0x4b5   : > { %744 = vst.msk [vmem:[%s317_s19] sm:$0xff] %vm338_vm1, %v743_v47 }
 0x4b6   : > { %1049 = shalt.err (!%p1046_p5)
}
 0x4b7   : > { %s1050_s8 = scalar_lea.hbm %s1333_s16, 128  ;;  %s1054_s18 = scalar_lea.hbm %s1385_s7, 256 }
 0x4b8   : > { %p1051_p8 = scmp.ne.s32.totalorder %s1333_s16, %s1050_s8  ;;  %p1055_p1 = scmp.lt.u32.totalorder %s1333_s16, %s1385_s7 }
 0x4b9   : > { %p1056_p3 = scmp.lt.u32.totalorder %s1054_s18, %s1050_s8  ;;  %p1058_p6 = scmp.lt.u32.totalorder %s1050_s8, %s1333_s16 }
 0x4ba   : > { %p1052_p9 = pnand %p1051_p8, %p1394_p12 }
 0x4bb   : > { %p1057_p11 = por %p1056_p3, %p1055_p1 }
 0x4bc   : > { %p1053_p0 = pneg %p1052_p9 }
 0x4bd   : > { %p1059_p13 = por %p1058_p6, %p1057_p11 }
 0x4bf   : > { %p1060_p7 = pnand %p1059_p13, %p1053_p0 }
 0x4c1   : > { %1063 = shalt.err (!%p1060_p7)
}
 0x4c2   : > { %954 = dma.vmem_to_hbm [thread:$0]  (%p1394_p12), %s1335_s21, 128, %s1333_s16, %s746_s22  }
 0x4c3 PF: > { %s771_s20 = sand.u32 1, %s1090_s24   ;;  %p1395_p10 = scmp.ne.s32.totalorder %s1390_s14, 0 }
 0x4c4   : > { %p1396_p2 = scmp.ge.s32.totalorder %s1102_s27, 2  ;;  %s772_s9 = scalar_lea.sflag [#allocation4], %s771_s20 }
 0x4c6   : > { %p961_p4 = pnand %p1396_p2, %p1395_p10 }
 0x4c8   : > { %1085 = dma.done.wait (!%p961_p4), %s772_s9, 128  }
 0x4c9   : > { %1087 = vsyncadd (!%p961_p4), %s772_s9, 4294967168  ;;  %p20_p5 = scmp.ge.s32.totalorder %s1175_s30, 4   ;;  %s1397_s24 = smov %s1094_s25 }
 0x4ca   : > { %s1398_s25 = smov %s1098_s26  ;;  %s1399_s26 = smov %s1187_s10 }
 0x4cb   : > { %s1400_s27 = smov %s1175_s30  ;;  %22 = sbr.rel (!%p20_p5) target bundleno = 5 (0x5), region = 99 }
 0x4d2   :  { %777 = vsyncpa [#allocation3], 1 }
 0x4d3   :  { %779 = vsyncpa [#allocation3 + $0x1], 1 }
 0x4d4   :  { %780 = vsyncpa [#allocation4], 1 }
 0x4d5   :  { %782 = vsyncpa [#allocation4 + $0x1], 1 }

</bundles_post_ra>
